<compile_context>
chip_gen: v6e
topology: v6e:2x2x1
jax: 0.10.0
libtpu: 0.0.40
codegen_flags: <defaults>
</compile_context>

<pallas_src>
import math

import jax
import jax.numpy as jnp
import numpy as np
from jax import lax
from jax.experimental import pallas as pl
from jax.experimental.pallas import tpu as pltpu  # noqa: F401  (TPU backend)

# ----------------------------- configuration --------------------------------
B = 2                 # batch
C_IN = 4              # backbone output channels
H = W = 16            # feature-map spatial size
HW = H * W            # 256 -> multiple of 128 lanes (lane-dense stores)
HIDDEN = 32           # transformer.d_model (divisible by 32 for GroupNorm)
NUM_Q = 8             # num_queries
NUM_CLASSES = 16
NUM_DEC_LAYERS = 3    # transformer.num_decoder_layers
N_ROWS = NUM_DEC_LAYERS * B * NUM_Q        # 48 (multiple of 8 sublanes)
GN_GROUPS = 32
GN_EPS = 1e-5
INV_SIG_EPS = 1e-3    # DINO's inverse_sigmoid eps
DN_LABELBOOK = 100

PACK = 128                          # packed head-output lane width
COL_CLS = 4                         # logits live in lanes [4, 4+NUM_CLASSES)
COL_W1 = COL_CLS + NUM_CLASSES      # pre-ReLU h1 lives in lanes [20, 20+HIDDEN)


# ------------------------------ fused kernel ---------------------------------
def dino_kernel(x_ref, cw_ref, cb_ref, gamma_ref, beta_ref,
                hs_ref, refp_ref,
                wA_ref, bA_ref, w2p_ref, b2_ref, w3p_ref, b3p_ref,
                src_ref, head_ref):
    """Fused input_proj (1x1 conv + GroupNorm) + decoder prediction head.

    x_ref:     (B, C_IN, HW)        channel-major backbone feature
    cw_ref:    (HIDDEN, C_IN)       conv weight (torch [out, in] layout)
    cb/gamma/beta: (HIDDEN, 1)      per-channel conv bias / GN affine
    hs_ref:    (N_ROWS, HIDDEN)     decoder states, flattened over (L, B, Q)
    refp_ref:  (N_ROWS, PACK)       reference points, lanes 0:4 valid, rest 0
    wA_ref:    (HIDDEN, PACK)       lanes 4:20 = class_embed W, 20:52 = MLP w1
    bA_ref:    (1, PACK)            matching biases
    w2p_ref:   (PACK, HIDDEN)       rows 20:52 = MLP w2, rest 0
    b2_ref:    (1, HIDDEN)
    w3p_ref:   (HIDDEN, PACK)       lanes 0:4 = MLP w3, rest 0
    b3p_ref:   (1, PACK)
    src_ref:   (B, HIDDEN, HW)      GroupNorm'ed projected feature (lane-dense)
    head_ref:  (N_ROWS, PACK)       lanes 0:4 = pred boxes, 4:20 = pred logits
    """
    # ---------------- input_proj: channel matmul + GroupNorm -----------------
    cw = cw_ref[...]
    cb = cb_ref[...]
    gamma = gamma_ref[...]
    beta = beta_ref[...]
    gsize = HIDDEN // GN_GROUPS
    for b in range(x_ref.shape[0]):                       # static B=2 loop
        xb = x_ref[b]                                     # [C_IN, HW]
        y = jnp.dot(cw, xb, preferred_element_type=jnp.float32) + cb  # [HIDDEN, HW]
        if gsize == 1:
            # 32 groups of 1 channel -> per-channel stats over spatial (lanes).
            mean = jnp.mean(y, axis=1, keepdims=True)
            var = jnp.mean((y - mean) ** 2, axis=1, keepdims=True)
            yn = (y - mean) / jnp.sqrt(var + GN_EPS)
        else:  # general grouped path (not traced at this config)
            yg = y.reshape(GN_GROUPS, gsize, HW)
            mean = jnp.mean(yg, axis=(1, 2), keepdims=True)
            var = jnp.mean((yg - mean) ** 2, axis=(1, 2), keepdims=True)
            yn = ((yg - mean) / jnp.sqrt(var + GN_EPS)).reshape(HIDDEN, HW)
        src_ref[b] = yn * gamma + beta                    # full 256-lane store

    # ----------------------- decoder prediction head -------------------------
    hs = hs_ref[...]                                      # [N, HIDDEN]
    # Fused (x @ w1 | x @ wc) in one lane-padded matmul.
    h1l = jnp.dot(hs, wA_ref[...],
                  preferred_element_type=jnp.float32) + bA_ref[...]     # [N, PACK]
    a1 = jnp.maximum(h1l, 0.0)
    # Zero rows of w2p outside [COL_W1, COL_W1+HIDDEN) discard everything but
    # relu(x @ w1 + b1), so this equals relu(h1) @ w2 + b2.
    h2 = jnp.maximum(
        jnp.dot(a1, w2p_ref[...], preferred_element_type=jnp.float32) + b2_ref[...],
        0.0)                                                            # [N, HIDDEN]
    delta = jnp.dot(h2, w3p_ref[...],
                    preferred_element_type=jnp.float32) + b3p_ref[...]  # [N, PACK]

    # inverse_sigmoid(reference) + sigmoid (DINO semantics); padded lanes are
    # finite garbage and get masked out below.
    r = jnp.clip(refp_ref[...], 0.0, 1.0)
    inv_sig = jnp.log(jnp.maximum(r, INV_SIG_EPS) /
                      jnp.maximum(1.0 - r, INV_SIG_EPS))
    coord = jax.nn.sigmoid(delta + inv_sig)                             # lanes 0:4

    lane = lax.broadcasted_iota(jnp.int32, (N_ROWS, PACK), 1)
    packed = jnp.where(lane < COL_CLS, coord,
                       jnp.where(lane < COL_CLS + NUM_CLASSES, h1l, 0.0))
    head_ref[...] = packed                                # single full 128-lane store


# --------------------------- parameter construction --------------------------
def make_params(key):
    ks = jax.random.split(key, 6)

    # input_proj: Conv2d(C_IN, HIDDEN, k=1) xavier_uniform, bias 0; GN affine.
    limit = math.sqrt(6.0 / (C_IN + HIDDEN))
    conv_w = jax.random.uniform(ks[0], (HIDDEN, C_IN), jnp.float32, -limit, limit)
    conv_b = jnp.zeros((HIDDEN,), jnp.float32)
    gn_gamma = jnp.ones((HIDDEN,), jnp.float32)
    gn_beta = jnp.zeros((HIDDEN,), jnp.float32)

    # bbox_embed MLP: Linear(D,D), Linear(D,D), Linear(D,4); last layer zeroed
    # per DINO __init__.  Weights stored as [in, out].
    def lin(k, fan_in, fan_out):
        bound = 1.0 / math.sqrt(fan_in)
        w = jax.random.uniform(k, (fan_in, fan_out), jnp.float32, -bound, bound)
        b = jax.random.uniform(jax.random.fold_in(k, 1), (fan_out,),
                               jnp.float32, -bound, bound)
        return w, b

    w1, b1 = lin(ks[1], HIDDEN, HIDDEN)
    w2, b2 = lin(ks[2], HIDDEN, HIDDEN)
    w3 = jnp.zeros((HIDDEN, 4), jnp.float32)      # nn.init.constant_(.., 0)
    b3 = jnp.zeros((4,), jnp.float32)

    # class_embed: Linear(D, num_classes) with focal-style bias init.
    prior_prob = 0.01
    bias_value = -math.log((1 - prior_prob) / prior_prob)
    wc, _ = lin(ks[3], HIDDEN, NUM_CLASSES)
    bc = jnp.full((NUM_CLASSES,), bias_value, jnp.float32)

    # label_enc embedding (only weight[0, 0] * 0.0 is used in forward).
    label_enc = jax.random.normal(ks[4], (DN_LABELBOOK + 1, HIDDEN), jnp.float32)

    # NOTE: bbox_embed / class_embed are shared across decoder layers, which
    # matches DINO defaults (dec_pred_*_embed_share=True).
    return dict(conv_w=conv_w, conv_b=conv_b, gn_gamma=gn_gamma, gn_beta=gn_beta,
                head=(w1, b1, w2, b2, w3, b3, wc, bc), label_enc=label_enc)


def prepare_kernel_params(p):
    """One-time repack of torch-layout params into kernel (lane-padded) layout."""
    w1, b1, w2, b2, w3, b3, wc, bc = p["head"]

    wA = jnp.zeros((HIDDEN, PACK), jnp.float32)
    wA = wA.at[:, COL_CLS:COL_CLS + NUM_CLASSES].set(wc)
    wA = wA.at[:, COL_W1:COL_W1 + HIDDEN].set(w1)
    bA = jnp.zeros((1, PACK), jnp.float32)
    bA = bA.at[0, COL_CLS:COL_CLS + NUM_CLASSES].set(bc)
    bA = bA.at[0, COL_W1:COL_W1 + HIDDEN].set(b1)

    w2p = jnp.zeros((PACK, HIDDEN), jnp.float32).at[COL_W1:COL_W1 + HIDDEN, :].set(w2)
    w3p = jnp.zeros((HIDDEN, PACK), jnp.float32).at[:, :4].set(w3)
    b3p = jnp.zeros((1, PACK), jnp.float32).at[0, :4].set(b3)

    return dict(conv_w=p["conv_w"],
                conv_b=p["conv_b"].reshape(HIDDEN, 1),
                gn_gamma=p["gn_gamma"].reshape(HIDDEN, 1),
                gn_beta=p["gn_beta"].reshape(HIDDEN, 1),
                wA=wA, bA=bA, w2p=w2p, b2=b2.reshape(1, HIDDEN),
                w3p=w3p, b3p=b3p)


# ------------------------------- fused forward -------------------------------
@jax.jit
def dino_forward(x_nchw, hs, reference_all, kp, label_enc):
    # hs[0] += label_enc.weight[0, 0] * 0.0   (numerical no-op, kept for parity)
    hs = hs.at[0].add(label_enc[0, 0] * 0.0)

    x_cm = x_nchw.reshape(B, C_IN, HW)                    # free (NCHW contiguity)
    hs_flat = hs.reshape(N_ROWS, HIDDEN)                  # free
    ref_flat = reference_all[:-1].reshape(N_ROWS, 4)
    ref_pad = jnp.pad(ref_flat, ((0, 0), (0, PACK - 4)))  # lanes 4: -> 0

    src_cm, head_packed = pl.pallas_call(
        dino_kernel,
        out_shape=(jax.ShapeDtypeStruct((B, HIDDEN, HW), jnp.float32),
                   jax.ShapeDtypeStruct((N_ROWS, PACK), jnp.float32)),
    )(x_cm, kp["conv_w"], kp["conv_b"], kp["gn_gamma"], kp["gn_beta"],
      hs_flat, ref_pad,
      kp["wA"], kp["bA"], kp["w2p"], kp["b2"], kp["w3p"], kp["b3p"])

    srcs_nchw = src_cm.reshape(B, HIDDEN, H, W)           # free (no transpose)
    outputs_coord = head_packed[:, :4].reshape(NUM_DEC_LAYERS, B, NUM_Q, 4)
    outputs_class = head_packed[:, COL_CLS:COL_CLS + NUM_CLASSES].reshape(
        NUM_DEC_LAYERS, B, NUM_Q, NUM_CLASSES)
    return srcs_nchw, outputs_coord, outputs_class


# ------------------------------- pure-JAX reference --------------------------
def reference_forward(x_nchw, hs, reference_all, p):
    # input_proj: 1x1 conv + GroupNorm(32, hidden) with PyTorch semantics.
    y = jnp.einsum('oc,bchw->bohw', p["conv_w"], x_nchw) \
        + p["conv_b"][None, :, None, None]
    gsize = HIDDEN // GN_GROUPS
    yg = y.reshape(B, GN_GROUPS, gsize, H, W)
    mean = jnp.mean(yg, axis=(2, 3, 4), keepdims=True)
    var = jnp.mean((yg - mean) ** 2, axis=(2, 3, 4), keepdims=True)
    yn = ((yg - mean) / jnp.sqrt(var + GN_EPS)).reshape(B, HIDDEN, H, W)
    src = yn * p["gn_gamma"][None, :, None, None] + p["gn_beta"][None, :, None, None]

    w1, b1, w2, b2, w3, b3, wc, bc = p["head"]
    hs = hs.at[0].add(p["label_enc"][0, 0] * 0.0)
    ref = reference_all[:-1]
    h1 = jax.nn.relu(hs @ w1 + b1)
    h2 = jax.nn.relu(h1 @ w2 + b2)
    delta = h2 @ w3 + b3
    r = jnp.clip(ref, 0.0, 1.0)
    inv = jnp.log(jnp.maximum(r, INV_SIG_EPS) / jnp.maximum(1.0 - r, INV_SIG_EPS))
    coords = jax.nn.sigmoid(delta + inv)
    logits = hs @ wc + bc
    return src, coords, logits


# ------------------------------------ main -----------------------------------
if __name__ == "__main__":
    key = jax.random.PRNGKey(0)
    k_in, k_hs, k_ref, k_param = jax.random.split(key, 4)

    # Synthetic backbone feature map (NCHW, as the PyTorch module expects).
    x_nchw = jax.random.normal(k_in, (B, C_IN, H, W), jnp.float32)

    # Synthetic transformer outputs (stand-in for self.transformer(...)):
    #   hs:        [num_dec_layers, B, num_queries, hidden]
    #   reference: [num_dec_layers + 1, B, num_queries, 4]  (sigmoid space)
    hs = jax.random.normal(k_hs, (NUM_DEC_LAYERS, B, NUM_Q, HIDDEN), jnp.float32)
    reference_all = jax.nn.sigmoid(
        jax.random.normal(k_ref, (NUM_DEC_LAYERS + 1, B, NUM_Q, 4), jnp.float32))

    params = make_params(k_param)
    kparams = prepare_kernel_params(params)

    srcs_nchw, outputs_coord, outputs_class = dino_forward(
        x_nchw, hs, reference_all, kparams, params["label_enc"])

    out = {
        "pred_logits": outputs_class[-1],   # [B, num_queries, num_classes]
        "pred_boxes": outputs_coord[-1],    # [B, num_queries, 4]
        "dn_meta": None,                    # dn path (prepare_for_cdn) not run
    }

    jax.block_until_ready(srcs_nchw)
    jax.block_until_ready(out["pred_logits"])
    jax.block_until_ready(out["pred_boxes"])

    # Cross-check against a pure-JAX reference of the same math.
    ref_src, ref_coords, ref_logits = reference_forward(
        x_nchw, hs, reference_all, params)
    np.testing.assert_allclose(np.asarray(srcs_nchw), np.asarray(ref_src),
                               rtol=1e-5, atol=1e-5)
    np.testing.assert_allclose(np.asarray(outputs_coord), np.asarray(ref_coords),
                               rtol=1e-5, atol=1e-5)
    np.testing.assert_allclose(np.asarray(outputs_class), np.asarray(ref_logits),
                               rtol=1e-5, atol=1e-5)

    print("KERNEL_OK")
</pallas_src>

<mosaic_0001>
module attributes {stable_mosaic.version = 11 : i64} {
  func.func @dino_kernel(%arg0: memref<2x4x256xf32, #tpu.memory_space<vmem>>, %arg1: memref<32x4xf32, #tpu.memory_space<vmem>>, %arg2: memref<32x1xf32, #tpu.memory_space<vmem>>, %arg3: memref<32x1xf32, #tpu.memory_space<vmem>>, %arg4: memref<32x1xf32, #tpu.memory_space<vmem>>, %arg5: memref<48x32xf32, #tpu.memory_space<vmem>>, %arg6: memref<48x128xf32, #tpu.memory_space<vmem>>, %arg7: memref<32x128xf32, #tpu.memory_space<vmem>>, %arg8: memref<1x128xf32, #tpu.memory_space<vmem>>, %arg9: memref<128x32xf32, #tpu.memory_space<vmem>>, %arg10: memref<1x32xf32, #tpu.memory_space<vmem>>, %arg11: memref<32x128xf32, #tpu.memory_space<vmem>>, %arg12: memref<1x128xf32, #tpu.memory_space<vmem>>, %arg13: memref<2x32x256xf32, #tpu.memory_space<vmem>>, %arg14: memref<48x128xf32, #tpu.memory_space<vmem>>) attributes {dimension_semantics = [], scalar_prefetch = 0 : i64, scratch_operands = 0 : i64, tpu.core_type = #tpu.core_type<tc>} {
    %c0 = arith.constant 0 : index
    %c0_0 = arith.constant 0 : index
    %0 = vector.load %arg1[%c0, %c0_0] : memref<32x4xf32, #tpu.memory_space<vmem>>, vector<32x4xf32>
    %c0_1 = arith.constant 0 : index
    %c0_2 = arith.constant 0 : index
    %1 = vector.load %arg2[%c0_1, %c0_2] : memref<32x1xf32, #tpu.memory_space<vmem>>, vector<32x1xf32>
    %c0_3 = arith.constant 0 : index
    %c0_4 = arith.constant 0 : index
    %2 = vector.load %arg3[%c0_3, %c0_4] : memref<32x1xf32, #tpu.memory_space<vmem>>, vector<32x1xf32>
    %c0_5 = arith.constant 0 : index
    %c0_6 = arith.constant 0 : index
    %3 = vector.load %arg4[%c0_5, %c0_6] : memref<32x1xf32, #tpu.memory_space<vmem>>, vector<32x1xf32>
    %c0_7 = arith.constant 0 : index
    %c0_8 = arith.constant 0 : index
    %c0_9 = arith.constant 0 : index
    %4 = vector.load %arg0[%c0_7, %c0_8, %c0_9] : memref<2x4x256xf32, #tpu.memory_space<vmem>>, vector<1x4x256xf32>
    %5 = vector.shape_cast %4 : vector<1x4x256xf32> to vector<4x256xf32>
    %cst = arith.constant dense<0.000000e+00> : vector<32x256xf32>
    %6 = tpu.matmul %0, %5, %cst {dimension_numbers = #tpu.dot_dimension_numbers<[1], [0], [0], [1], [0, 0, 1, 1], [], []>} : vector<32x4xf32>, vector<4x256xf32>, vector<32x256xf32> -> vector<32x256xf32>
    %7 = vector.broadcast %1 : vector<32x1xf32> to vector<32x256xf32>
    %8 = arith.addf %6, %7 : vector<32x256xf32>
    %cst_10 = arith.constant dense<0.000000e+00> : vector<32xf32>
    %9 = vector.multi_reduction <add>, %8, %cst_10 [1] : vector<32x256xf32> to vector<32xf32>
    %10 = vector.shape_cast %9 : vector<32xf32> to vector<32x1xf32>
    %cst_11 = arith.constant 2.560000e+02 : f32
    %11 = vector.broadcast %cst_11 : f32 to vector<32x1xf32>
    %12 = arith.divf %10, %11 : vector<32x1xf32>
    %13 = vector.broadcast %12 : vector<32x1xf32> to vector<32x256xf32>
    %14 = arith.subf %8, %13 : vector<32x256xf32>
    %15 = arith.mulf %14, %14 : vector<32x256xf32>
    %cst_12 = arith.constant dense<0.000000e+00> : vector<32xf32>
    %16 = vector.multi_reduction <add>, %15, %cst_12 [1] : vector<32x256xf32> to vector<32xf32>
    %17 = vector.shape_cast %16 : vector<32xf32> to vector<32x1xf32>
    %cst_13 = arith.constant 2.560000e+02 : f32
    %18 = vector.broadcast %cst_13 : f32 to vector<32x1xf32>
    %19 = arith.divf %17, %18 : vector<32x1xf32>
    %20 = vector.broadcast %12 : vector<32x1xf32> to vector<32x256xf32>
    %21 = arith.subf %8, %20 : vector<32x256xf32>
    %cst_14 = arith.constant 9.99999974E-6 : f32
    %22 = vector.broadcast %cst_14 : f32 to vector<32x1xf32>
    %23 = arith.addf %19, %22 : vector<32x1xf32>
    %24 = math.sqrt %23 : vector<32x1xf32>
    %25 = vector.broadcast %24 : vector<32x1xf32> to vector<32x256xf32>
    %26 = arith.divf %21, %25 : vector<32x256xf32>
    %27 = vector.broadcast %2 : vector<32x1xf32> to vector<32x256xf32>
    %28 = arith.mulf %26, %27 : vector<32x256xf32>
    %29 = vector.broadcast %3 : vector<32x1xf32> to vector<32x256xf32>
    %30 = arith.addf %28, %29 : vector<32x256xf32>
    %c0_15 = arith.constant 0 : index
    %c0_16 = arith.constant 0 : index
    %c0_17 = arith.constant 0 : index
    %31 = vector.load %arg13[%c0_15, %c0_16, %c0_17] : memref<2x32x256xf32, #tpu.memory_space<vmem>>, vector<1x32x256xf32>
    %32 = vector.shape_cast %31 : vector<1x32x256xf32> to vector<32x256xf32>
    %33 = vector.shape_cast %30 : vector<32x256xf32> to vector<1x32x256xf32>
    tpu.vector_store %arg13[%c0_15, %c0_16, %c0_17], %33 {strides = array<i32>} : memref<2x32x256xf32, #tpu.memory_space<vmem>>, vector<1x32x256xf32>,
    %c1 = arith.constant 1 : index
    %c0_18 = arith.constant 0 : index
    %c0_19 = arith.constant 0 : index
    %34 = vector.load %arg0[%c1, %c0_18, %c0_19] : memref<2x4x256xf32, #tpu.memory_space<vmem>>, vector<1x4x256xf32>
    %35 = vector.shape_cast %34 : vector<1x4x256xf32> to vector<4x256xf32>
    %cst_20 = arith.constant dense<0.000000e+00> : vector<32x256xf32>
    %36 = tpu.matmul %0, %35, %cst_20 {dimension_numbers = #tpu.dot_dimension_numbers<[1], [0], [0], [1], [0, 0, 1, 1], [], []>} : vector<32x4xf32>, vector<4x256xf32>, vector<32x256xf32> -> vector<32x256xf32>
    %37 = vector.broadcast %1 : vector<32x1xf32> to vector<32x256xf32>
    %38 = arith.addf %36, %37 : vector<32x256xf32>
    %cst_21 = arith.constant dense<0.000000e+00> : vector<32xf32>
    %39 = vector.multi_reduction <add>, %38, %cst_21 [1] : vector<32x256xf32> to vector<32xf32>
    %40 = vector.shape_cast %39 : vector<32xf32> to vector<32x1xf32>
    %cst_22 = arith.constant 2.560000e+02 : f32
    %41 = vector.broadcast %cst_22 : f32 to vector<32x1xf32>
    %42 = arith.divf %40, %41 : vector<32x1xf32>
    %43 = vector.broadcast %42 : vector<32x1xf32> to vector<32x256xf32>
    %44 = arith.subf %38, %43 : vector<32x256xf32>
    %45 = arith.mulf %44, %44 : vector<32x256xf32>
    %cst_23 = arith.constant dense<0.000000e+00> : vector<32xf32>
    %46 = vector.multi_reduction <add>, %45, %cst_23 [1] : vector<32x256xf32> to vector<32xf32>
    %47 = vector.shape_cast %46 : vector<32xf32> to vector<32x1xf32>
    %cst_24 = arith.constant 2.560000e+02 : f32
    %48 = vector.broadcast %cst_24 : f32 to vector<32x1xf32>
    %49 = arith.divf %47, %48 : vector<32x1xf32>
    %50 = vector.broadcast %42 : vector<32x1xf32> to vector<32x256xf32>
    %51 = arith.subf %38, %50 : vector<32x256xf32>
    %cst_25 = arith.constant 9.99999974E-6 : f32
    %52 = vector.broadcast %cst_25 : f32 to vector<32x1xf32>
    %53 = arith.addf %49, %52 : vector<32x1xf32>
    %54 = math.sqrt %53 : vector<32x1xf32>
    %55 = vector.broadcast %54 : vector<32x1xf32> to vector<32x256xf32>
    %56 = arith.divf %51, %55 : vector<32x256xf32>
    %57 = vector.broadcast %2 : vector<32x1xf32> to vector<32x256xf32>
    %58 = arith.mulf %56, %57 : vector<32x256xf32>
    %59 = vector.broadcast %3 : vector<32x1xf32> to vector<32x256xf32>
    %60 = arith.addf %58, %59 : vector<32x256xf32>
    %c1_26 = arith.constant 1 : index
    %c0_27 = arith.constant 0 : index
    %c0_28 = arith.constant 0 : index
    %61 = vector.load %arg13[%c1_26, %c0_27, %c0_28] : memref<2x32x256xf32, #tpu.memory_space<vmem>>, vector<1x32x256xf32>
    %62 = vector.shape_cast %61 : vector<1x32x256xf32> to vector<32x256xf32>
    %63 = vector.shape_cast %60 : vector<32x256xf32> to vector<1x32x256xf32>
    tpu.vector_store %arg13[%c1_26, %c0_27, %c0_28], %63 {strides = array<i32>} : memref<2x32x256xf32, #tpu.memory_space<vmem>>, vector<1x32x256xf32>,
    %c0_29 = arith.constant 0 : index
    %c0_30 = arith.constant 0 : index
    %64 = vector.load %arg5[%c0_29, %c0_30] : memref<48x32xf32, #tpu.memory_space<vmem>>, vector<48x32xf32>
    %c0_31 = arith.constant 0 : index
    %c0_32 = arith.constant 0 : index
    %65 = vector.load %arg7[%c0_31, %c0_32] : memref<32x128xf32, #tpu.memory_space<vmem>>, vector<32x128xf32>
    %cst_33 = arith.constant dense<0.000000e+00> : vector<48x128xf32>
    %66 = tpu.matmul %64, %65, %cst_33 {dimension_numbers = #tpu.dot_dimension_numbers<[1], [0], [0], [1], [0, 0, 1, 1], [], []>} : vector<48x32xf32>, vector<32x128xf32>, vector<48x128xf32> -> vector<48x128xf32>
    %c0_34 = arith.constant 0 : index
    %c0_35 = arith.constant 0 : index
    %67 = vector.load %arg8[%c0_34, %c0_35] : memref<1x128xf32, #tpu.memory_space<vmem>>, vector<1x128xf32>
    %68 = vector.broadcast %67 : vector<1x128xf32> to vector<48x128xf32>
    %69 = arith.addf %66, %68 : vector<48x128xf32>
    %cst_36 = arith.constant 0.000000e+00 : f32
    %70 = vector.broadcast %cst_36 : f32 to vector<48x128xf32>
    %71 = arith.maximumf %69, %70 : vector<48x128xf32>
    %c0_37 = arith.constant 0 : index
    %c0_38 = arith.constant 0 : index
    %72 = vector.load %arg9[%c0_37, %c0_38] : memref<128x32xf32, #tpu.memory_space<vmem>>, vector<128x32xf32>
    %cst_39 = arith.constant dense<0.000000e+00> : vector<48x32xf32>
    %73 = tpu.matmul %71, %72, %cst_39 {dimension_numbers = #tpu.dot_dimension_numbers<[1], [0], [0], [1], [0, 0, 1, 1], [], []>} : vector<48x128xf32>, vector<128x32xf32>, vector<48x32xf32> -> vector<48x32xf32>
    %c0_40 = arith.constant 0 : index
    %c0_41 = arith.constant 0 : index
    %74 = vector.load %arg10[%c0_40, %c0_41] : memref<1x32xf32, #tpu.memory_space<vmem>>, vector<1x32xf32>
    %75 = vector.broadcast %74 : vector<1x32xf32> to vector<48x32xf32>
    %76 = arith.addf %73, %75 : vector<48x32xf32>
    %cst_42 = arith.constant 0.000000e+00 : f32
    %77 = vector.broadcast %cst_42 : f32 to vector<48x32xf32>
    %78 = arith.maximumf %76, %77 : vector<48x32xf32>
    %c0_43 = arith.constant 0 : index
    %c0_44 = arith.constant 0 : index
    %79 = vector.load %arg11[%c0_43, %c0_44] : memref<32x128xf32, #tpu.memory_space<vmem>>, vector<32x128xf32>
    %cst_45 = arith.constant dense<0.000000e+00> : vector<48x128xf32>
    %80 = tpu.matmul %78, %79, %cst_45 {dimension_numbers = #tpu.dot_dimension_numbers<[1], [0], [0], [1], [0, 0, 1, 1], [], []>} : vector<48x32xf32>, vector<32x128xf32>, vector<48x128xf32> -> vector<48x128xf32>
    %c0_46 = arith.constant 0 : index
    %c0_47 = arith.constant 0 : index
    %81 = vector.load %arg12[%c0_46, %c0_47] : memref<1x128xf32, #tpu.memory_space<vmem>>, vector<1x128xf32>
    %82 = vector.broadcast %81 : vector<1x128xf32> to vector<48x128xf32>
    %83 = arith.addf %80, %82 : vector<48x128xf32>
    %c0_48 = arith.constant 0 : index
    %c0_49 = arith.constant 0 : index
    %84 = vector.load %arg6[%c0_48, %c0_49] : memref<48x128xf32, #tpu.memory_space<vmem>>, vector<48x128xf32>
    %cst_50 = arith.constant 0.000000e+00 : f32
    %cst_51 = arith.constant 1.000000e+00 : f32
    %85 = vector.broadcast %cst_50 : f32 to vector<48x128xf32>
    %86 = arith.maximumf %85, %84 : vector<48x128xf32>
    %87 = vector.broadcast %cst_51 : f32 to vector<48x128xf32>
    %88 = arith.minimumf %87, %86 : vector<48x128xf32>
    %cst_52 = arith.constant 1.000000e-03 : f32
    %89 = vector.broadcast %cst_52 : f32 to vector<48x128xf32>
    %90 = arith.maximumf %88, %89 : vector<48x128xf32>
    %cst_53 = arith.constant 1.000000e+00 : f32
    %91 = vector.broadcast %cst_53 : f32 to vector<48x128xf32>
    %92 = arith.subf %91, %88 : vector<48x128xf32>
    %cst_54 = arith.constant 1.000000e-03 : f32
    %93 = vector.broadcast %cst_54 : f32 to vector<48x128xf32>
    %94 = arith.maximumf %92, %93 : vector<48x128xf32>
    %95 = arith.divf %90, %94 : vector<48x128xf32>
    %96 = math.log %95 : vector<48x128xf32>
    %97 = arith.addf %83, %96 : vector<48x128xf32>
    %98 = arith.negf %97 : vector<48x128xf32>
    %99 = math.exp %98 : vector<48x128xf32>
    %cst_55 = arith.constant 1.000000e+00 : f32
    %100 = vector.broadcast %cst_55 : f32 to vector<48x128xf32>
    %101 = arith.addf %100, %99 : vector<48x128xf32>
    %102 = arith.divf %100, %101 : vector<48x128xf32>
    %103 = tpu.iota {dimensions = array<i32: 1>} : vector<48x128xi32>
    %c4_i32 = arith.constant 4 : i32
    %104 = vector.broadcast %c4_i32 : i32 to vector<48x128xi32>
    %105 = arith.cmpi slt, %103, %104 : vector<48x128xi32>
    %c20_i32 = arith.constant 20 : i32
    %106 = vector.broadcast %c20_i32 : i32 to vector<48x128xi32>
    %107 = arith.cmpi slt, %103, %106 : vector<48x128xi32>
    %cst_56 = arith.constant 0.000000e+00 : f32
    %108 = vector.broadcast %cst_56 : f32 to vector<48x128xf32>
    %109 = arith.select %107, %69, %108 : vector<48x128xi1>, vector<48x128xf32>
    %110 = arith.select %105, %102, %109 : vector<48x128xi1>, vector<48x128xf32>
    %c0_57 = arith.constant 0 : index
    %c0_58 = arith.constant 0 : index
    %111 = vector.load %arg14[%c0_57, %c0_58] : memref<48x128xf32, #tpu.memory_space<vmem>>, vector<48x128xf32>
    tpu.vector_store %arg14[%c0_57, %c0_58], %110 {strides = array<i32>} : memref<48x128xf32, #tpu.memory_space<vmem>>, vector<48x128xf32>,
    return
  }
}

</mosaic_0001>

<bundles_post_ra>
// kernel: dino_forward.1
= control target key start
LH: loop header
LB: loop body
LE: loop exit
PB: predicated region body
PF: predicated region fallthrough
CT: control target
= control target key end

     0   :  { %vm98_vm0 = vcmask 1043456   ;;  %v1325_v2 = vmov 0.0   ;;  %v1326_v5 = vmov 0   ;;  %vm85_vm1 = vcmask 31744   ;;  %s1879_s0 = inlined_call_operand.vmem [shape: f32[2,4,256], index: 0, kind: input, shape index: {}]   ;;  %s1880_s1 = inlined_call_operand.vmem [shape: f32[32,4], index: 1, kind: input, shape index: {}]   ;;  %s1881_s7 = inlined_call_operand.vmem [shape: f32[32,128], index: 7, kind: input, shape index: {}]   ;;  %s1882_s2 = inlined_call_operand.vmem [shape: f32[32,1], index: 2, kind: input, shape index: {}]   ;;  %s1883_s9 = inlined_call_operand.vmem [shape: f32[128,32], index: 9, kind: input, shape index: {}]   ;;  %s1884_s5 = inlined_call_operand.vmem [shape: f32[48,32], index: 5, kind: input, shape index: {}]   ;;  %s1885_s8 = inlined_call_operand.vmem [shape: f32[1,128], index: 8, kind: input, shape index: {}]   ;;  %s1886_s11 = inlined_call_operand.vmem [shape: f32[32,128], index: 11, kind: input, shape index: {}]   ;;  %s1887_s3 = inlined_call_operand.vmem [shape: f32[32,1], index: 3, kind: input, shape index: {}]   ;;  %s1888_s4 = inlined_call_operand.vmem [shape: f32[32,1], index: 4, kind: input, shape index: {}]   ;;  %s1889_s10 = inlined_call_operand.vmem [shape: f32[1,32], index: 10, kind: input, shape index: {}]   ;;  %s1890_s13 = inlined_call_operand.vmem [shape: f32[2,32,256], index: 13, kind: output, shape index: {0}]   ;;  %s1891_s6 = inlined_call_operand.vmem [shape: f32[48,128], index: 6, kind: input, shape index: {}]   ;;  %s1892_s12 = inlined_call_operand.vmem [shape: f32[1,128], index: 12, kind: input, shape index: {}]   ;;  %s1893_s14 = inlined_call_operand.vmem [shape: f32[48,128], index: 14, kind: output, shape index: {1}]  }
   0x1   :  { %v62_v0 = vld [vmem:[%s1879_s0] sm:$0xff]  ;;  %v1086_v1 = vld [vmem:[%s1879_s0 + $0x8] sm:$0xff]  ;;  %167 = vmatprep.mubr.f32.mxu0 %v1325_v2  ;;  %421 = vmatprep.mubr.f32.mxu1 %v1325_v2  ;;  %v572_v7 = vld [vmem:[%s1881_s7 + $0x18] sm:$0xff]  ;;  %vm580_vm2 = vcmask 261120  }
   0x2   :  { %v84_v3 = vcombine.high %v62_v0, %v62_v0  ;;  %v352_v4 = vcombine.high %v1086_v1, %v1086_v1  ;;  %1241 = vset.pattern.permute.xlu0 %v1326_v5  ;;  %1242 = vset.pattern.permute.xlu1 %v1326_v5  ;;  %v46_v6 = vld [vmem:[%s1880_s1] sm:$0xff]  ;;  %v571_v8 = vld [vmem:[%s1881_s7 + $0x10] sm:$0xff]  ;;  %v47_v10 = vld [vmem:[%s1880_s1 + $0x8] sm:$0xff] }
   0x3   :  { %v50_v9 = vld [vmem:[%s1882_s2] sm:$0xff]  ;;  %v570_v11 = vld [vmem:[%s1881_s7 + $0x8] sm:$0xff]  ;;  %v48_v13 = vld [vmem:[%s1880_s1 + $0x10] sm:$0xff] }
   0x4   :  { %1080 = vmatprep.subr.msk.mxu0 %vm98_vm0, %v84_v3  ;;  %1087 = vmatprep.subr.msk.mxu1 %vm98_vm0, %v352_v4  ;;  %v51_v12 = vld [vmem:[%s1882_s2 + $0x8] sm:$0xff]  ;;  %v569_v14 = vld [vmem:[%s1881_s7] sm:$0xff]  ;;  %v52_v15 = vld [vmem:[%s1882_s2 + $0x10] sm:$0xff] }
   0x5   :  { %1081 = vmatpush1.msk.msra.mxu0 %vm98_vm0, %v62_v0  ;;  %1088 = vmatpush1.msk.msra.mxu1 %vm98_vm0, %v1086_v1  ;;  %v715_v16 = vld [vmem:[%s1883_s9 + $0x78] sm:$0xff]  ;;  %v563_v18 = vld [vmem:[%s1884_s5] sm:$0xff]  ;;  %v714_v19 = vld [vmem:[%s1883_s9 + $0x70] sm:$0xff] }
   0x6   :  { %1082 = vmatmul.mubr.msk.f32.vlgmr.msra.gmra.mxu0 %vm85_vm1, %v46_v6  ;;  %1089 = vmatmul.mubr.msk.f32.vlgmr.msra.gmra.mxu1 %vm85_vm1, %v46_v6  ;;  %v49_v17 = vld [vmem:[%s1880_s1 + $0x18] sm:$0xff]  ;;  %v564_v21 = vld [vmem:[%s1884_s5 + $0x8] sm:$0xff]  ;;  %v565_v23 = vld [vmem:[%s1884_s5 + $0x10] sm:$0xff] }
   0x7   :  { %1164 = vmatprep.subr.mxu0 %v572_v7  ;;  %173 = vmatprep.mubr.f32.mxu0 %v1325_v2  ;;  %v53_v20 = vld [vmem:[%s1882_s2 + $0x18] sm:$0xff]  ;;  %v713_v22 = vld [vmem:[%s1883_s9 + $0x68] sm:$0xff]  ;;  %v712_v24 = vld [vmem:[%s1883_s9 + $0x60] sm:$0xff] }
   0x8   :  { %1165 = vmatpush3.msra.mxu0 %v572_v7  ;;  %427 = vmatprep.mubr.f32.mxu1 %v1325_v2  ;;  %v566_v25 = vld [vmem:[%s1884_s5 + $0x18] sm:$0xff]  ;;  %v567_v26 = vld [vmem:[%s1884_s5 + $0x20] sm:$0xff]  ;;  %v568_v27 = vld [vmem:[%s1884_s5 + $0x28] sm:$0xff] }
   0x9   :  { %1166 = vmatprep.subr.mxu0 %v571_v8  ;;  %65 = vperm.xlu0 %1241, %v50_v9   ;;  %v711_v28 = vld [vmem:[%s1883_s9 + $0x58] sm:$0xff]  ;;  %v710_v29 = vld [vmem:[%s1883_s9 + $0x50] sm:$0xff]  ;;  %v709_v30 = vld [vmem:[%s1883_s9 + $0x48] sm:$0xff] }
   0xa   :  { %1083 = vmatmul.mubr.msk.f32.gmra.mxu0 %vm85_vm1, %v47_v10  ;;  %1090 = vmatmul.mubr.msk.f32.gmra.mxu1 %vm85_vm1, %v47_v10  ;;  %v708_v31 = vld [vmem:[%s1883_s9 + $0x40] sm:$0xff]  ;;  %v707_v32 = vld [vmem:[%s1883_s9 + $0x38] sm:$0xff]  ;;  %v706_v33 = vld [vmem:[%s1883_s9 + $0x30] sm:$0xff] }
   0xb   :  { %1167 = vmatpush3.msra.mxu0 %v571_v8  ;;  %179 = vmatprep.mubr.f32.mxu0 %v1325_v2  ;;  %v705_v34 = vld [vmem:[%s1883_s9 + $0x28] sm:$0xff]  ;;  %v704_v35 = vld [vmem:[%s1883_s9 + $0x20] sm:$0xff]  ;;  %v703_v36 = vld [vmem:[%s1883_s9 + $0x18] sm:$0xff] }
   0xc   :  { %433 = vmatprep.mubr.f32.mxu1 %v1325_v2  ;;  %1168 = vmatprep.subr.mxu0 %v570_v11  ;;  %v702_v37 = vld [vmem:[%s1883_s9 + $0x10] sm:$0xff]  ;;  %v701_v38 = vld [vmem:[%s1883_s9 + $0x8] sm:$0xff]  ;;  %v700_v39 = vld [vmem:[%s1883_s9] sm:$0xff] }
   0xd   :  { %1169 = vmatpush3.msra.mxu0 %v570_v11  ;;  %70 = vperm.xlu0 %1241, %v51_v12  }
   0xe   :  { %1084 = vmatmul.mubr.msk.f32.gmra.mxu0 %vm85_vm1, %v48_v13  ;;  %1091 = vmatmul.mubr.msk.f32.gmra.mxu1 %vm85_vm1, %v48_v13 }
   0xf   :  { %185 = vmatprep.mubr.f32.mxu0 %v1325_v2  ;;  %1170 = vmatprep.subr.mxu0 %v569_v14 }
  0x10   :  { %1171 = vmatpush3.msra.mxu0 %v569_v14  ;;  %439 = vmatprep.mubr.f32.mxu1 %v1325_v2 }
  0x11   :  { %75 = vperm.xlu1 %1242, %v52_v15   ;;  %1181 = vmatprep.subr.mxu1 %v715_v16 }
  0x12   :  { %1085 = vmatmul.mubr.msk.f32.gmra.mxu0 %vm85_vm1, %v49_v17  ;;  %1092 = vmatmul.mubr.msk.f32.gmra.mxu1 %vm85_vm1, %v49_v17 }
  0x13   :  { %1172 = vmatprep.mubr.msk.f32.mxu0 %vm580_vm2, %v563_v18  ;;  %1182 = vmatpush3.msra.mxu1 %v715_v16  ;;  %v1101_v16 = vld [vmem:[%s1885_s8] ss:$0 sm:$0xff] }
  0x14   :  { %1183 = vmatprep.subr.mxu1 %v714_v19 }
  0x15   :  { %80 = vperm.xlu1 %1242, %v53_v20   ;;  %1184 = vmatpush3.msra.mxu1 %v714_v19 }
  0x16   :  { %1173 = vmatmul.mubr.msk.f32.vlgmr.msra.gmra.mxu0 %vm580_vm2, %v564_v21  ;;  %1185 = vmatprep.subr.mxu1 %v713_v22 }
  0x17   :  { %1175 = vmatprep.mubr.msk.f32.mxu0 %vm580_vm2, %v565_v23  ;;  %1186 = vmatpush3.msra.mxu1 %v713_v22 }
  0x18   :  { %1187 = vmatprep.subr.mxu1 %v712_v24 }
  0x19   :  { %1188 = vmatpush3.msra.mxu1 %v712_v24 }
  0x1a   :  { %1176 = vmatmul.mubr.msk.f32.gmra.mxu0 %vm580_vm2, %v566_v25  ;;  %1189 = vmatprep.subr.mxu1 %v711_v28 }
  0x1b   :  { %1178 = vmatprep.mubr.msk.f32.mxu0 %vm580_vm2, %v567_v26  ;;  %1190 = vmatpush3.msra.mxu1 %v711_v28 }
  0x1c   :  { %1191 = vmatprep.subr.mxu1 %v710_v29 }
  0x1d   :  { %1192 = vmatpush3.msra.mxu1 %v710_v29 }
  0x1e   :  { %1179 = vmatmul.mubr.msk.f32.gmra.mxu0 %vm580_vm2, %v568_v27  ;;  %1193 = vmatprep.subr.mxu1 %v709_v30 }
  0x1f   :  { %1194 = vmatpush3.msra.mxu1 %v709_v30 }
  0x20   :  { %1195 = vmatprep.subr.mxu1 %v708_v31 }
  0x21   :  { %1196 = vmatpush3.msra.mxu1 %v708_v31 }
  0x22   :  { %1197 = vmatprep.subr.mxu1 %v707_v32 }
  0x23   :  { %1198 = vmatpush3.msra.mxu1 %v707_v32 }
  0x24   :  { %1199 = vmatprep.subr.mxu1 %v706_v33 }
  0x25   :  { %1200 = vmatpush3.msra.mxu1 %v706_v33 }
  0x26   :  { %1201 = vmatprep.subr.mxu1 %v705_v34 }
  0x27   :  { %1202 = vmatpush3.msra.mxu1 %v705_v34 }
  0x28   :  { %1203 = vmatprep.subr.mxu1 %v704_v35 }
  0x29   :  { %1204 = vmatpush3.msra.mxu1 %v704_v35 }
  0x2a   :  { %1205 = vmatprep.subr.mxu1 %v703_v36 }
  0x2b   :  { %1206 = vmatpush3.msra.mxu1 %v703_v36 }
  0x2c   :  { %1207 = vmatprep.subr.mxu1 %v702_v37 }
  0x2d   :  { %1208 = vmatpush3.msra.mxu1 %v702_v37 }
  0x2e   :  { %1209 = vmatprep.subr.mxu1 %v701_v38 }
  0x2f   :  { %1210 = vmatpush3.msra.mxu1 %v701_v38 }
  0x30   :  { %1211 = vmatprep.subr.mxu1 %v700_v39 }
  0x31   :  { %1212 = vmatpush3.msra.mxu1 %v700_v39  ;;  %v827_v39 = vld [vmem:[%s1886_s11 + $0x18] sm:$0xff] }
  0x32   :  { %1222 = vmatprep.subr.mxu0 %v827_v39 }
  0x33   :  { %1223 = vmatpush3.msra.mxu0 %v827_v39 }
  0x84   :  { %v66_v40 = vpop.permute.xlu0 %65 }
  0x88   :  { %v71_v48 = vpop.permute.xlu0 %70 }
  0x8c   :  { %v76_v54 = vpop.permute.xlu1 %75 }
  0x90   :  { %v81_v6 = vpop.permute.xlu1 %80 }
  0xc6   :  { %v169_v41 = vpop.f32.mrf.mxu0  ;;  %v423_v42 = vpop.f32.mrf.mxu1 }
  0xc7   :  { %v1528_v43 = vadd.f32 %v423_v42, %v66_v40  ;;  %v1534_v49 = vadd.f32 %v169_v41, %v66_v40  ;;  %v825_v41 = vld [vmem:[%s1886_s11 + $0x8] sm:$0xff]  ;;  %v824_v42 = vld [vmem:[%s1886_s11] sm:$0xff] }
  0xc8   :  { %v171_v44 = vpop.f32.mrf.mxu0  ;;  %v425_v45 = vpop.f32.mrf.mxu1 }
  0xc9   :  { %v1530_v46 = vadd.f32 %v171_v44, %v66_v40  ;;  %v1532_v47 = vadd.f32 %v425_v45, %v66_v40  ;;  %v826_v40 = vld [vmem:[%s1886_s11 + $0x10] sm:$0xff] }
  0xca   :  { %v175_v50 = vpop.f32.mrf.mxu0  ;;  %v429_v51 = vpop.f32.mrf.mxu1  ;;  %1224 = vmatprep.subr.mxu0 %v826_v40 }
  0xcb   :  { %v446_v52 = vadd.f32 %v1532_v47, %v1528_v43  ;;  %v192_v53 = vadd.f32 %v1530_v46, %v1534_v49  ;;  %v1540_v55 = vadd.f32 %v429_v51, %v71_v48  ;;  %v1546_v60 = vadd.f32 %v175_v50, %v71_v48  ;;  %1225 = vmatpush3.msra.mxu0 %v826_v40 }
  0xcc   :  { %v177_v56 = vpop.f32.mrf.mxu0  ;;  %v431_v57 = vpop.f32.mrf.mxu1  ;;  %1226 = vmatprep.subr.mxu0 %v825_v41 }
  0xcd   :  { %v1542_v58 = vadd.f32 %v177_v56, %v71_v48  ;;  %v1544_v59 = vadd.f32 %v431_v57, %v71_v48  ;;  %447 = vadd.xlane.f32.xlu1 %v446_v52  ;;  %193 = vadd.xlane.f32.xlu0 %v192_v53 }
  0xce   :  { %v181_v61 = vpop.f32.mrf.mxu0  ;;  %v435_v62 = vpop.f32.mrf.mxu1  ;;  %1227 = vmatpush3.msra.mxu0 %v825_v41 }
  0xcf   :  { %v195_v63 = vadd.f32 %v1542_v58, %v1546_v60  ;;  %v449_v0 = vadd.f32 %v1544_v59, %v1540_v55  ;;  %v1552_v1 = vadd.f32 %v435_v62, %v76_v54  ;;  %v1558_v7 = vadd.f32 %v181_v61, %v76_v54  ;;  %1228 = vmatprep.subr.mxu0 %v824_v42 }
  0xd0   :  { %v183_v2 = vpop.f32.mrf.mxu0  ;;  %v437_v3 = vpop.f32.mrf.mxu1  ;;  %1229 = vmatpush3.msra.mxu0 %v824_v42 }
  0xd1   :  { %v1554_v4 = vadd.f32 %v183_v2, %v76_v54  ;;  %v1556_v5 = vadd.f32 %v437_v3, %v76_v54  ;;  %196 = vadd.xlane.f32.xlu1 %v195_v63  ;;  %450 = vadd.xlane.f32.xlu0 %v449_v0 }
  0xd2   :  { %v187_v8 = vpop.f32.mrf.mxu0  ;;  %v441_v9 = vpop.f32.mrf.mxu1 }
  0xd3   :  { %v452_v10 = vadd.f32 %v1556_v5, %v1552_v1  ;;  %v198_v11 = vadd.f32 %v1554_v4, %v1558_v7  ;;  %v1564_v13 = vadd.f32 %v441_v9, %v81_v6  ;;  %v1573_v18 = vadd.f32 %v187_v8, %v81_v6 }
  0xd4   :  { %v189_v12 = vpop.f32.mrf.mxu0  ;;  %v443_v14 = vpop.f32.mrf.mxu1 }
  0xd5   :  { %v1566_v15 = vadd.f32 %v189_v12, %v81_v6  ;;  %453 = vadd.xlane.f32.xlu1 %v452_v10  ;;  %199 = vadd.xlane.f32.xlu0 %v198_v11  ;;  %v1571_v17 = vadd.f32 %v443_v14, %v81_v6 }
  0xd6   :  { %v1174_v19 = vpop.f32.mrf.mxu0 }
  0xd7   :  { %v201_v20 = vadd.f32 %v1566_v15, %v1573_v18  ;;  %v1577_v21 = vadd.f32 %v1174_v19, %v1101_v16  ;;  %v455_v24 = vadd.f32 %v1571_v17, %v1564_v13 }
  0xd8   :  { %v665_v22 = vpop.f32.mrf.mxu0 }
  0xd9   :  { %v1579_v23 = vadd.f32 %v1101_v16, %v665_v22  ;;  %202 = vadd.xlane.f32.xlu0 %v201_v20  ;;  %v695_v27 = vmax.f32 %v1577_v21, 0.0 }
  0xda   :  { %v1177_v25 = vpop.f32.mrf.mxu0 }
  0xdb   :  { %v694_v26 = vmax.f32 %v1579_v23, 0.0  ;;  %v1585_v28 = vadd.f32 %v1177_v25, %v1101_v16 }
  0xdc   :  { %v675_v29 = vpop.f32.mrf.mxu0 }
  0xdd   :  { %v1587_v30 = vadd.f32 %v1101_v16, %v675_v29  ;;  %1213 = vmatprep.mubr.f32.mxu1 %v694_v26  ;;  %456 = vadd.xlane.f32.xlu0 %v455_v24  ;;  %v697_v33 = vmax.f32 %v1585_v28, 0.0 }
  0xde   :  { %v1180_v31 = vpop.f32.mrf.mxu0  ;;  %1214 = vmatmul.mubr.f32.vlgmr.msra.gmra.mxu1 %v695_v27 }
  0xdf   :  { %v696_v32 = vmax.f32 %v1587_v30, 0.0  ;;  %v1591_v34 = vadd.f32 %v1180_v31, %v1101_v16 }
  0xe0   :  { %v685_v35 = vpop.f32.mrf.mxu0 }
  0xe1   :  { %v1593_v36 = vadd.f32 %v1101_v16, %v685_v35  ;;  %1216 = vmatprep.mubr.f32.mxu1 %v696_v32  ;;  %v699_v38 = vmax.f32 %v1591_v34, 0.0 }
  0xe2   :  { %1217 = vmatmul.mubr.f32.gmra.mxu1 %v697_v33 }
  0xe3   :  { %v698_v37 = vmax.f32 %v1593_v36, 0.0 }
  0xe5   :  { %1219 = vmatprep.mubr.f32.mxu1 %v698_v37 }
  0xe6   :  { %1220 = vmatmul.mubr.f32.gmra.mxu1 %v699_v38 }
 0x156   :  { %v448_v44 = vpop.xlane.xlu1 %447  ;;  %v194_v45 = vpop.xlane.xlu0 %193 }
 0x157   :  { %v458_v48 = vmul.f32 0.00390625, %v448_v44  ;;  %v205_v50 = vmul.f32 0.00390625, %v194_v45  ;;  %v57_v44 = vld [vmem:[%s1887_s3 + $0x18] sm:$0xff]  ;;  %v55_v45 = vld [vmem:[%s1887_s3 + $0x8] sm:$0xff] }
 0x159   :  { %v1610_v51 = vsub.f32 %v1528_v43, %v458_v48  ;;  %v1613_v52 = vsub.f32 %v1532_v47, %v458_v48  ;;  %v1616_v53 = vsub.f32 %v1534_v49, %v205_v50  ;;  %v1619_v54 = vsub.f32 %v1530_v46, %v205_v50  ;;  %v59_v48 = vld [vmem:[%s1888_s4 + $0x8] sm:$0xff]  ;;  %v58_v50 = vld [vmem:[%s1888_s4] sm:$0xff] }
 0x15a   :  { %v197_v56 = vpop.xlane.xlu1 %196  ;;  %v451_v57 = vpop.xlane.xlu0 %450 }
 0x15b   :  { %v206_v61 = vmul.f32 0.00390625, %v197_v56  ;;  %v459_v62 = vmul.f32 0.00390625, %v451_v57  ;;  %v217_v63 = vmul.f32 %v1616_v53, %v1616_v53  ;;  %v218_v43 = vmul.f32 %v1619_v54, %v1619_v54  ;;  %v61_v56 = vld [vmem:[%s1888_s4 + $0x18] sm:$0xff]  ;;  %v60_v57 = vld [vmem:[%s1888_s4 + $0x10] sm:$0xff] }
 0x15c   :  { %v470_v47 = vmul.f32 %v1610_v51, %v1610_v51  ;;  %v471_v2 = vmul.f32 %v1613_v52, %v1613_v52 }
 0x15d   :  { %v1628_v0 = vsub.f32 %v1546_v60, %v206_v61  ;;  %v1631_v49 = vsub.f32 %v1542_v58, %v206_v61  ;;  %v1634_v46 = vsub.f32 %v1540_v55, %v459_v62  ;;  %v1639_v3 = vsub.f32 %v1544_v59, %v459_v62  ;;  %v1108_v61 = vld [vmem:[%s1889_s10] ss:$0 sm:$0xff] }
 0x15e   :  { %v454_v6 = vpop.xlane.xlu1 %453  ;;  %v200_v8 = vpop.xlane.xlu0 %199  ;;  %v225_v9 = vadd.f32 %v218_v43, %v217_v63  ;;  %v478_v59 = vadd.f32 %v471_v2, %v470_v47 }
 0x15f   :  { %v460_v10 = vmul.f32 0.00390625, %v454_v6  ;;  %v207_v11 = vmul.f32 0.00390625, %v200_v8  ;;  %v219_v60 = vmul.f32 %v1628_v0, %v1628_v0  ;;  %v220_v58 = vmul.f32 %v1631_v49, %v1631_v49 }
 0x160   :  { %226 = vadd.xlane.f32.xlu1 %v225_v9  ;;  %v472_v14 = vmul.f32 %v1634_v46, %v1634_v46  ;;  %v473_v24 = vmul.f32 %v1639_v3, %v1639_v3 }
 0x161   :  { %v1646_v55 = vsub.f32 %v1558_v7, %v207_v11  ;;  %v1649_v12 = vsub.f32 %v1554_v4, %v207_v11  ;;  %v1654_v16 = vsub.f32 %v1552_v1, %v460_v10  ;;  %v1657_v19 = vsub.f32 %v1556_v5, %v460_v10 }
 0x162   :  { %v203_v20 = vpop.xlane.xlu0 %202  ;;  %v228_v22 = vadd.f32 %v220_v58, %v219_v60  ;;  %v481_v29 = vadd.f32 %v473_v24, %v472_v14 }
 0x163   :  { %v208_v7 = vmul.f32 0.00390625, %v203_v20  ;;  %v221_v4 = vmul.f32 %v1646_v55, %v1646_v55  ;;  %v222_v25 = vmul.f32 %v1649_v12, %v1649_v12  ;;  %v474_v31 = vmul.f32 %v1654_v16, %v1654_v16 }
 0x164   :  { %229 = vadd.xlane.f32.xlu0 %v228_v22  ;;  %479 = vadd.xlane.f32.xlu1 %v478_v59  ;;  %v475_v32 = vmul.f32 %v1657_v19, %v1657_v19 }
 0x165   :  { %v1666_v1 = vsub.f32 %v1573_v18, %v208_v7  ;;  %v1669_v5 = vsub.f32 %v1566_v15, %v208_v7  ;;  %v231_v26 = vadd.f32 %v222_v25, %v221_v4 }
 0x166   :  { %v457_v27 = vpop.xlane.xlu0 %456  ;;  %v484_v39 = vadd.f32 %v475_v32, %v474_v31 }
 0x167   :  { %v461_v33 = vmul.f32 0.00390625, %v457_v27  ;;  %v223_v35 = vmul.f32 %v1666_v1, %v1666_v1  ;;  %v224_v18 = vmul.f32 %v1669_v5, %v1669_v5 }
 0x168   :  { %482 = vadd.xlane.f32.xlu0 %v481_v29  ;;  %232 = vadd.xlane.f32.xlu1 %v231_v26 }
 0x169   :  { %v1680_v15 = vsub.f32 %v1564_v13, %v461_v33  ;;  %v1683_v37 = vsub.f32 %v1571_v17, %v461_v33  ;;  %v234_v38 = vadd.f32 %v224_v18, %v223_v35  ;;  %v54_v13 = vld [vmem:[%s1887_s3] sm:$0xff]  ;;  %v56_v17 = vld [vmem:[%s1887_s3 + $0x10] sm:$0xff] }
 0x16b   :  { %v476_v40 = vmul.f32 %v1680_v15, %v1680_v15  ;;  %v477_v41 = vmul.f32 %v1683_v37, %v1683_v37 }
 0x16c   :  { %485 = vadd.xlane.f32.xlu1 %v484_v39  ;;  %235 = vadd.xlane.f32.xlu0 %v234_v38 }
 0x16d   :  { %v487_v42 = vadd.f32 %v477_v41, %v476_v40 }
 0x170   :  { %488 = vadd.xlane.f32.xlu0 %v487_v42 }
 0x17d   :  { %287 = vperm.xlu1 %1242, %v54_v13  }
 0x181   :  { %297 = vperm.xlu1 %1242, %v56_v17  }
 0x185   :  { %302 = vperm.xlu1 %1242, %v57_v44  }
 0x186   :  { %292 = vperm.xlu0 %1241, %v55_v45  }
 0x189   :  { %320 = vperm.xlu1 %1242, %v59_v48  }
 0x18a   :  { %315 = vperm.xlu0 %1241, %v58_v50  }
 0x18d   :  { %330 = vperm.xlu1 %1242, %v61_v56  }
 0x18e   :  { %325 = vperm.xlu0 %1241, %v60_v57  }
 0x19e   :  { %v1215_v62 = vpop.f32.mrf.mxu1 }
 0x19f   :  { %v795_v63 = vadd.f32 %v1215_v62, %v1108_v61 }
 0x1a0   :  { %v789_v43 = vpop.f32.mrf.mxu1 }
 0x1a1   :  { %v790_v47 = vadd.f32 %v1108_v61, %v789_v43  ;;  %v819_v8 = vmax.f32 %v795_v63, 0.0 }
 0x1a2   :  { %v1218_v2 = vpop.f32.mrf.mxu1 }
 0x1a3   :  { %v818_v6 = vmax.f32 %v790_v47, 0.0  ;;  %v805_v9 = vadd.f32 %v1218_v2, %v1108_v61 }
 0x1a4   :  { %v799_v10 = vpop.f32.mrf.mxu1 }
 0x1a5   :  { %v800_v11 = vadd.f32 %v1108_v61, %v799_v10  ;;  %1230 = vmatprep.mubr.msk.f32.mxu0 %vm580_vm2, %v818_v6  ;;  %v821_v59 = vmax.f32 %v805_v9, 0.0 }
 0x1a6   :  { %v1221_v60 = vpop.f32.mrf.mxu1  ;;  %1231 = vmatmul.mubr.msk.f32.vlgmr.msra.gmra.mxu0 %vm580_vm2, %v819_v8 }
 0x1a7   :  { %v820_v58 = vmax.f32 %v800_v11, 0.0  ;;  %v815_v14 = vadd.f32 %v1221_v60, %v1108_v61 }
 0x1a8   :  { %v809_v20 = vpop.f32.mrf.mxu1 }
 0x1a9   :  { %v810_v22 = vadd.f32 %v1108_v61, %v809_v20  ;;  %1233 = vmatprep.mubr.msk.f32.mxu0 %vm580_vm2, %v820_v58  ;;  %v823_v7 = vmax.f32 %v815_v14, 0.0 }
 0x1aa   :  { %1234 = vmatmul.mubr.msk.f32.gmra.mxu0 %vm580_vm2, %v821_v59 }
 0x1ab   :  { %v822_v24 = vmax.f32 %v810_v22, 0.0 }
 0x1ad   :  { %1236 = vmatprep.mubr.msk.f32.mxu0 %vm580_vm2, %v822_v24 }
 0x1ae   :  { %1237 = vmatmul.mubr.msk.f32.gmra.mxu0 %vm580_vm2, %v823_v7 }
 0x1e9   :  { %v227_v4 = vpop.xlane.xlu1 %226 }
 0x1ea   :  { %v237_v25 = vmul.f32 0.00390625, %v227_v4 }
 0x1ec   :  { %v241_v26 = vadd.f32 1e-05, %v237_v25 }
 0x1ed   :  { %v480_v27 = vpop.xlane.xlu1 %479  ;;  %v230_v29 = vpop.xlane.xlu0 %229 }
 0x1ee   :  { %1245 = vrsqrt.f32 %v241_v26  ;;  %v490_v31 = vmul.f32 0.00390625, %v480_v27  ;;  %v238_v32 = vmul.f32 0.00390625, %v230_v29  ;;  %vm247_vm3 = vcmp.eq.f32.partialorder %v241_v26, inf }
 0x1ef   :  { %v250_v63 = vand.u32 2147483648, %v241_v26  ;;  %vm249_vm4 = vcmp.eq.f32.partialorder %v241_v26, 0.0 }
 0x1f0   :  { %v494_v33 = vadd.f32 1e-05, %v490_v31  ;;  %v242_v35 = vadd.f32 1e-05, %v238_v32 }
 0x1f1   :  { %v233_v18 = vpop.xlane.xlu1 %232  ;;  %v483_v38 = vpop.xlane.xlu0 %482 }
 0x1f2   :  { %v239_v39 = vmul.f32 0.00390625, %v233_v18  ;;  %v491_v40 = vmul.f32 0.00390625, %v483_v38  ;;  %1247 = vrsqrt.f32 %v494_v33  ;;  %vm500_vm5 = vcmp.eq.f32.partialorder %v494_v33, inf }
 0x1f3   :  { %1249 = vrsqrt.f32 %v242_v35  ;;  %v503_v10 = vand.u32 2147483648, %v494_v33  ;;  %vm502_vm6 = vcmp.eq.f32.partialorder %v494_v33, 0.0  ;;  %vm254_vm7 = vcmp.eq.f32.partialorder %v242_v35, inf }
 0x1f4   :  { %v243_v41 = vadd.f32 1e-05, %v239_v39  ;;  %v495_v42 = vadd.f32 1e-05, %v491_v40  ;;  %v257_v58 = vand.u32 2147483648, %v242_v35  ;;  %vm256_vm8 = vcmp.eq.f32.partialorder %v242_v35, 0.0 }
 0x1f5   :  { %v486_v13 = vpop.xlane.xlu1 %485  ;;  %v236_v17 = vpop.xlane.xlu0 %235 }
 0x1f6   :  { %v492_v44 = vmul.f32 0.00390625, %v486_v13  ;;  %v240_v45 = vmul.f32 0.00390625, %v236_v17  ;;  %1251 = vrsqrt.f32 %v243_v41  ;;  %vm261_vm9 = vcmp.eq.f32.partialorder %v243_v41, inf }
 0x1f7   :  { %1253 = vrsqrt.f32 %v495_v42  ;;  %v264_v25 = vand.u32 2147483648, %v243_v41  ;;  %vm263_vm10 = vcmp.eq.f32.partialorder %v243_v41, 0.0  ;;  %vm507_vm11 = vcmp.eq.f32.partialorder %v495_v42, inf }
 0x1f8   :  { %v1722_v48 = vadd.f32 1e-05, %v492_v44  ;;  %v1724_v50 = vadd.f32 1e-05, %v240_v45  ;;  %v510_v29 = vand.u32 2147483648, %v495_v42  ;;  %vm509_vm12 = vcmp.eq.f32.partialorder %v495_v42, 0.0 }
 0x1f9   :  { %v489_v56 = vpop.xlane.xlu0 %488  ;;  %v288_v4 = vpop.permute.xlu1 %287 }
 0x1fa   :  { %v493_v57 = vmul.f32 0.00390625, %v489_v56  ;;  %1255 = vrsqrt.f32 %v1722_v48  ;;  %vm514_vm13 = vcmp.eq.f32.partialorder %v1722_v48, inf  ;;  %v517_v39 = vand.u32 2147483648, %v1722_v48 }
 0x1fb   :  { %v1246_v61 = vpop.eup %1245  ;;  %1257 = vrsqrt.f32 %v1724_v50  ;;  %vm516_vm14 = vcmp.eq.f32.partialorder %v1722_v48, 0.0  ;;  %vm268_vm15 = vcmp.eq.f32.partialorder %v1724_v50, inf  ;;  %vm270_vm0 = vcmp.eq.f32.partialorder %v1724_v50, 0.0 }
 0x1fc   :  { %v246_v62 = vmul.f32 %v1246_v61, %v241_v26  ;;  %v1728_v43 = vadd.f32 1e-05, %v493_v57 }
 0x1fd   :  { %v1739_v13 = vpop.permute.xlu1 %297 }
 0x1fe   :  { %v248_v47 = vsel %vm247_vm3, %v241_v26, %v246_v62  ;;  %1259 = vrsqrt.f32 %v1728_v43  ;;  %vm521_vm1 = vcmp.eq.f32.partialorder %v1728_v43, inf  ;;  %vm523_vm2 = vcmp.eq.f32.partialorder %v1728_v43, 0.0 }
 0x1ff   :  { %v251_v2 = vsel %vm249_vm4, %v250_v63, %v248_v47  ;;  %v1248_v6 = vpop.eup %1247  ;;  %v524_v47 = vand.u32 2147483648, %v1728_v43 }
 0x200   :  { %1261 = vrcp.f32 %v251_v2  ;;  %v1250_v8 = vpop.eup %1249  ;;  %v499_v9 = vmul.f32 %v1248_v6, %v494_v33 }
 0x201   :  { %v253_v11 = vmul.f32 %v1250_v8, %v242_v35  ;;  %v293_v17 = vpop.permute.xlu0 %292 }
 0x202   :  { %v501_v60 = vsel %vm500_vm5, %v494_v33, %v499_v9  ;;  %v1750_v9 = vpop.permute.xlu1 %302 }
 0x203   :  { %v1252_v59 = vpop.eup %1251  ;;  %v504_v14 = vsel %vm502_vm6, %v503_v10, %v501_v60  ;;  %v255_v20 = vsel %vm254_vm7, %v242_v35, %v253_v11 }
 0x204   :  { %v1254_v22 = vpop.eup %1253  ;;  %1263 = vrcp.f32 %v504_v14  ;;  %v258_v24 = vsel %vm256_vm8, %v257_v58, %v255_v20  ;;  %v260_v7 = vmul.f32 %v1252_v59, %v243_v41 }
 0x205   :  { %1265 = vrcp.f32 %v258_v24  ;;  %v506_v26 = vmul.f32 %v1254_v22, %v495_v42  ;;  %v316_v10 = vpop.permute.xlu0 %315 }
 0x206   :  { %v262_v27 = vsel %vm261_vm9, %v243_v41, %v260_v7 }
 0x207   :  { %v1256_v31 = vpop.eup %1255  ;;  %v265_v32 = vsel %vm263_vm10, %v264_v25, %v262_v27  ;;  %v508_v33 = vsel %vm507_vm11, %v495_v42, %v506_v26  ;;  %v271_v42 = vand.u32 2147483648, %v1724_v50  ;;  %v321_v26 = vpop.permute.xlu1 %320 }
 0x208   :  { %v1258_v18 = vpop.eup %1257  ;;  %v511_v38 = vsel %vm509_vm12, %v510_v29, %v508_v33  ;;  %v513_v35 = vmul.f32 %v1256_v31, %v1722_v48  ;;  %1267 = vrcp.f32 %v265_v32 }
 0x209   :  { %1269 = vrcp.f32 %v511_v38  ;;  %v267_v40 = vmul.f32 %v1258_v18, %v1724_v50 }
 0x20a   :  { %v515_v41 = vsel %vm514_vm13, %v1722_v48, %v513_v35 }
 0x20b   :  { %v1260_v44 = vpop.eup %1259  ;;  %v518_v45 = vsel %vm516_vm14, %v517_v39, %v515_v41  ;;  %v269_v56 = vsel %vm268_vm15, %v1724_v50, %v267_v40 }
 0x20c   :  { %v272_v61 = vsel %vm270_vm0, %v271_v42, %v269_v56  ;;  %v520_v62 = vmul.f32 %v1260_v44, %v1728_v43  ;;  %1271 = vrcp.f32 %v518_v45 }
 0x20d   :  { %v1262_v57 = vpop.eup %1261  ;;  %1273 = vrcp.f32 %v272_v61 }
 0x20e   :  { %v274_v48 = vmul.f32 %v1262_v57, %v1616_v53  ;;  %v275_v63 = vmul.f32 %v1262_v57, %v1619_v54  ;;  %v522_v2 = vsel %vm521_vm1, %v1728_v43, %v520_v62 }
 0x20f   :  { %v525_v8 = vsel %vm523_vm2, %v524_v47, %v522_v2 }
 0x210   :  { %v305_v6 = vmul.f32 %v288_v4, %v274_v48  ;;  %v306_v50 = vmul.f32 %v288_v4, %v275_v63  ;;  %1275 = vrcp.f32 %v525_v8  ;;  %v948_v8 = vld [vmem:[%s1891_s6] sm:$0xff] }
 0x211   :  { %v1264_v11 = vpop.eup %1263 }
 0x212   :  { %v333_v60 = vadd.f32 %v316_v10, %v305_v6  ;;  %v334_v58 = vadd.f32 %v316_v10, %v306_v50  ;;  %v1266_v53 = vpop.eup %1265  ;;  %v527_v54 = vmul.f32 %v1264_v11, %v1610_v51  ;;  %v528_v59 = vmul.f32 %v1264_v11, %v1613_v52  ;;  %v949_v50 = vld [vmem:[%s1891_s6 + $0x8] sm:$0xff] }
 0x213   :  { %v277_v14 = vmul.f32 %v1266_v53, %v1628_v0  ;;  %v278_v20 = vmul.f32 %v1266_v53, %v1631_v49  ;;  %v954_v11 = vmax.f32 %v948_v8, 0.0 }
 0x214   :  { %341 = vst [vmem:[%s1890_s13] sm:$0xff] %v333_v60  ;;  %342 = vst [vmem:[%s1890_s13 + $0x8] sm:$0xff] %v334_v58  ;;  %v538_v43 = vmul.f32 %v527_v54, %v288_v4  ;;  %v539_v22 = vmul.f32 %v528_v59, %v288_v4  ;;  %v950_v60 = vld [vmem:[%s1891_s6 + $0x10] sm:$0xff]  ;;  %v953_v54 = vld [vmem:[%s1891_s6 + $0x28] sm:$0xff] }
 0x215   :  { %v1268_v24 = vpop.eup %1267  ;;  %v307_v7 = vmul.f32 %v293_v17, %v277_v14  ;;  %v308_v25 = vmul.f32 %v293_v17, %v278_v20  ;;  %v960_v59 = vmin.f32 %v954_v11, 1.0  ;;  %v956_v14 = vmax.f32 %v950_v60, 0.0  ;;  %v952_v20 = vld [vmem:[%s1891_s6 + $0x20] sm:$0xff] }
 0x216   :  { %v1270_v51 = vpop.eup %1269  ;;  %v546_v52 = vadd.f32 %v538_v43, %v316_v10  ;;  %v547_v27 = vadd.f32 %v539_v22, %v316_v10  ;;  %v280_v0 = vmul.f32 %v1268_v24, %v1646_v55  ;;  %v281_v49 = vmul.f32 %v1268_v24, %v1649_v12  ;;  %v951_v10 = vld [vmem:[%s1891_s6 + $0x18] sm:$0xff] }
 0x217   :  { %v530_v29 = vmul.f32 %v1270_v51, %v1634_v46  ;;  %v531_v31 = vmul.f32 %v1270_v51, %v1639_v3  ;;  %v335_v32 = vadd.f32 %v321_v26, %v307_v7  ;;  %v336_v33 = vadd.f32 %v321_v26, %v308_v25  ;;  %v326_v46 = vpop.permute.xlu0 %325 }
 0x218   :  { %1093 = vst [vmem:[%s1890_s13 + $0x40] sm:$0xff] %v546_v52  ;;  %1094 = vst [vmem:[%s1890_s13 + $0x48] sm:$0xff] %v547_v27  ;;  %v309_v4 = vmul.f32 %v1739_v13, %v280_v0  ;;  %v310_v55 = vmul.f32 %v1739_v13, %v281_v49  ;;  %v957_v53 = vmax.f32 %v951_v10, 0.0  ;;  %v959_v43 = vmax.f32 %v953_v54, 0.0 }
 0x219   :  { %v1272_v18 = vpop.eup %1271  ;;  %v540_v12 = vmul.f32 %v530_v29, %v293_v17  ;;  %v541_v38 = vmul.f32 %v531_v31, %v293_v17  ;;  %343 = vst [vmem:[%s1890_s13 + $0x10] sm:$0xff] %v335_v32  ;;  %344 = vst [vmem:[%s1890_s13 + $0x18] sm:$0xff] %v336_v33  ;;  %v958_v7 = vmax.f32 %v952_v20, 0.0  ;;  %v972_v25 = vsub.f32 1.0, %v960_v59 }
 0x21a   :  { %v1274_v3 = vpop.eup %1273  ;;  %v533_v35 = vmul.f32 %v1272_v18, %v1654_v16  ;;  %v534_v39 = vmul.f32 %v1272_v18, %v1657_v19  ;;  %v337_v40 = vadd.f32 %v326_v46, %v309_v4  ;;  %v338_v41 = vadd.f32 %v326_v46, %v310_v55 }
 0x21b   :  { %v548_v42 = vadd.f32 %v540_v12, %v321_v26  ;;  %v549_v44 = vadd.f32 %v541_v38, %v321_v26  ;;  %v283_v17 = vmul.f32 %v1274_v3, %v1666_v1  ;;  %v284_v45 = vmul.f32 %v1274_v3, %v1669_v5  ;;  %v331_v5 = vpop.permute.xlu1 %330 }
 0x21c   :  { %v542_v56 = vmul.f32 %v533_v35, %v1739_v13  ;;  %v543_v57 = vmul.f32 %v534_v39, %v1739_v13  ;;  %345 = vst [vmem:[%s1890_s13 + $0x20] sm:$0xff] %v337_v40  ;;  %346 = vst [vmem:[%s1890_s13 + $0x28] sm:$0xff] %v338_v41  ;;  %v963_v24 = vmin.f32 %v957_v53, 1.0  ;;  %v962_v51 = vmin.f32 %v956_v14, 1.0 }
 0x21d   :  { %v1276_v16 = vpop.eup %1275  ;;  %1095 = vst [vmem:[%s1890_s13 + $0x50] sm:$0xff] %v548_v42  ;;  %1096 = vst [vmem:[%s1890_s13 + $0x58] sm:$0xff] %v549_v44  ;;  %v311_v19 = vmul.f32 %v1750_v9, %v283_v17  ;;  %v312_v1 = vmul.f32 %v1750_v9, %v284_v45  ;;  %v965_v26 = vmin.f32 %v959_v43, 1.0  ;;  %v964_v0 = vmin.f32 %v958_v7, 1.0 }
 0x21e   :  { %v536_v13 = vmul.f32 %v1276_v16, %v1680_v15  ;;  %v537_v61 = vmul.f32 %v1276_v16, %v1683_v37  ;;  %v550_v62 = vadd.f32 %v542_v56, %v326_v46  ;;  %v551_v48 = vadd.f32 %v543_v57, %v326_v46 }
 0x21f   :  { %v339_v63 = vadd.f32 %v331_v5, %v311_v19  ;;  %v340_v47 = vadd.f32 %v331_v5, %v312_v1  ;;  %v975_v27 = vsub.f32 1.0, %v963_v24  ;;  %v978_v49 = vmax.f32 %v972_v25, 0.001 }
 0x220   :  { %v544_v2 = vmul.f32 %v536_v13, %v1750_v9  ;;  %v545_v6 = vmul.f32 %v537_v61, %v1750_v9  ;;  %1097 = vst [vmem:[%s1890_s13 + $0x60] sm:$0xff] %v550_v62  ;;  %1098 = vst [vmem:[%s1890_s13 + $0x68] sm:$0xff] %v551_v48  ;;  %v955_v9 = vmax.f32 %v949_v50, 0.0  ;;  %v974_v29 = vsub.f32 1.0, %v962_v51  ;;  %v1109_v62 = vld [vmem:[%s1892_s12] ss:$0 sm:$0xff] }
 0x221   :  { %347 = vst [vmem:[%s1890_s13 + $0x30] sm:$0xff] %v339_v63  ;;  %348 = vst [vmem:[%s1890_s13 + $0x38] sm:$0xff] %v340_v47  ;;  %v977_v31 = vsub.f32 1.0, %v965_v26  ;;  %v981_v32 = vmax.f32 %v975_v27, 0.001  ;;  %v976_v33 = vsub.f32 1.0, %v964_v0 }
 0x222   :  { %v552_v15 = vadd.f32 %v544_v2, %v331_v5  ;;  %v553_v37 = vadd.f32 %v545_v6, %v331_v5  ;;  %v961_v58 = vmin.f32 %v955_v9, 1.0  ;;  %v980_v4 = vmax.f32 %v974_v29, 0.001 }
 0x223   :  { %v983_v55 = vmax.f32 %v977_v31, 0.001  ;;  %v982_v18 = vmax.f32 %v976_v33, 0.001  ;;  %v966_v46 = vmax.f32 %v960_v59, 0.001 }
 0x224   :  { %1099 = vst [vmem:[%s1890_s13 + $0x70] sm:$0xff] %v552_v15  ;;  %1100 = vst [vmem:[%s1890_s13 + $0x78] sm:$0xff] %v553_v37  ;;  %v973_v22 = vsub.f32 1.0, %v961_v58  ;;  %v967_v12 = vmax.f32 %v961_v58, 0.001 }
 0x225   :  { %v969_v39 = vmax.f32 %v963_v24, 0.001  ;;  %v968_v42 = vmax.f32 %v962_v51, 0.001  ;;  %v971_v17 = vmax.f32 %v965_v26, 0.001 }
 0x226   :  { %v979_v52 = vmax.f32 %v973_v22, 0.001  ;;  %v970_v57 = vmax.f32 %v964_v0, 0.001 }
 0x228   :  { %1277 = vrcp.f32 %v979_v52 }
 0x229   :  { %1279 = vrcp.f32 %v978_v49 }
 0x22a   :  { %1281 = vrcp.f32 %v981_v32 }
 0x22b   :  { %1283 = vrcp.f32 %v980_v4 }
 0x22c   :  { %1285 = vrcp.f32 %v983_v55 }
 0x22d   :  { %1287 = vrcp.f32 %v982_v18 }
 0x235   :  { %v1278_v38 = vpop.eup %1277 }
 0x236   :  { %v1280_v3 = vpop.eup %1279  ;;  %v987_v35 = vmul.f32 %v1278_v38, %v967_v12 }
 0x237   :  { %v1282_v40 = vpop.eup %1281  ;;  %v985_v41 = vmul.f32 %v1280_v3, %v966_v46  ;;  %v1050_v46 = vlaneseq }
 0x238   :  { %v1284_v44 = vpop.eup %1283  ;;  %1289 = vlog2.f32 %v987_v35  ;;  %v991_v56 = vmul.f32 %v1282_v40, %v969_v39 }
 0x239   :  { %v1286_v45 = vpop.eup %1285  ;;  %1291 = vlog2.f32 %v985_v41  ;;  %v989_v19 = vmul.f32 %v1284_v44, %v968_v42  ;;  %v1051_v41 = vand.u32 127, %v1050_v46 }
 0x23a   :  { %v1288_v16 = vpop.eup %1287  ;;  %v995_v1 = vmul.f32 %v1286_v45, %v971_v17  ;;  %1293 = vlog2.f32 %v991_v56 }
 0x23b   :  { %v993_v5 = vmul.f32 %v1288_v16, %v970_v57  ;;  %1295 = vlog2.f32 %v989_v19  ;;  %vm1053_vm3 = vcmp.lt.s32.totalorder %v1051_v41, 20  ;;  %vm1052_vm4 = vcmp.lt.s32.totalorder %v1051_v41, 4 }
 0x23c   :  { %1297 = vlog2.f32 %v995_v1  ;;  %v1055_v56 = vsel %vm1053_vm3, %v1577_v21, 0.0  ;;  %v1054_v19 = vsel %vm1053_vm3, %v1579_v23, 0.0  ;;  %v1056_v23 = vsel %vm1053_vm3, %v1587_v30, 0.0 }
 0x23d   :  { %1299 = vlog2.f32 %v993_v5  ;;  %v1058_v30 = vsel %vm1053_vm3, %v1593_v36, 0.0 }
 0x245   :  { %v1290_v13 = vpop.eup %1289 }
 0x246   :  { %v1292_v61 = vpop.eup %1291  ;;  %v999_v48 = vmul.f32 0.6931472, %v1290_v13  ;;  %v1057_v13 = vsel %vm1053_vm3, %v1585_v28, 0.0  ;;  %v1059_v28 = vsel %vm1053_vm3, %v1591_v34, 0.0 }
 0x247   :  { %v1294_v63 = vpop.eup %1293  ;;  %v997_v6 = vmul.f32 0.6931472, %v1292_v61 }
 0x248   :  { %v1296_v15 = vpop.eup %1295  ;;  %v1003_v10 = vmul.f32 0.6931472, %v1294_v63 }
 0x249   :  { %v1298_v50 = vpop.eup %1297  ;;  %v1001_v59 = vmul.f32 0.6931472, %v1296_v15 }
 0x24a   :  { %v1300_v60 = vpop.eup %1299  ;;  %v1007_v20 = vmul.f32 0.6931472, %v1298_v50 }
 0x24b   :  { %v1005_v25 = vmul.f32 0.6931472, %v1300_v60 }
 0x266   :  { %v1232_v47 = vpop.f32.mrf.mxu0 }
 0x267   :  { %v925_v2 = vadd.f32 %v1232_v47, %v1109_v62 }
 0x268   :  { %v919_v37 = vpop.f32.mrf.mxu0 }
 0x269   :  { %v1009_v8 = vadd.f32 %v999_v48, %v925_v2  ;;  %v920_v9 = vadd.f32 %v1109_v62, %v919_v37 }
 0x26a   :  { %v1235_v11 = vpop.f32.mrf.mxu0 }
 0x26b   :  { %v1117_v58 = vmul.f32 -1.442695, %v1009_v8  ;;  %v1008_v53 = vadd.f32 %v997_v6, %v920_v9  ;;  %v935_v54 = vadd.f32 %v1235_v11, %v1109_v62 }
 0x26c   :  { %v929_v14 = vpop.f32.mrf.mxu0 }
 0x26d   :  { %1301 = vpow2.f32 %v1117_v58  ;;  %v1116_v43 = vmul.f32 -1.442695, %v1008_v53  ;;  %v1011_v22 = vadd.f32 %v1003_v10, %v935_v54  ;;  %v930_v24 = vadd.f32 %v1109_v62, %v929_v14 }
 0x26e   :  { %v1238_v7 = vpop.f32.mrf.mxu0 }
 0x26f   :  { %1303 = vpow2.f32 %v1116_v43  ;;  %v1119_v51 = vmul.f32 -1.442695, %v1011_v22  ;;  %v1010_v26 = vadd.f32 %v1001_v59, %v930_v24  ;;  %v945_v52 = vadd.f32 %v1238_v7, %v1109_v62 }
 0x270   :  { %v939_v27 = vpop.f32.mrf.mxu0 }
 0x271   :  { %1305 = vpow2.f32 %v1119_v51  ;;  %v1118_v0 = vmul.f32 -1.442695, %v1010_v26  ;;  %v1013_v49 = vadd.f32 %v1007_v20, %v945_v52  ;;  %v940_v29 = vadd.f32 %v1109_v62, %v939_v27 }
 0x273   :  { %1307 = vpow2.f32 %v1118_v0  ;;  %v1121_v31 = vmul.f32 -1.442695, %v1013_v49  ;;  %v1012_v32 = vadd.f32 %v1005_v25, %v940_v29 }
 0x275   :  { %1309 = vpow2.f32 %v1121_v31  ;;  %v1120_v33 = vmul.f32 -1.442695, %v1012_v32 }
 0x277   :  { %1311 = vpow2.f32 %v1120_v33 }
 0x27a   :  { %v1302_v4 = vpop.eup %1301 }
 0x27b   :  { %v1033_v55 = vadd.f32 1.0, %v1302_v4 }
 0x27c   :  { %v1304_v18 = vpop.eup %1303 }
 0x27d   :  { %1313 = vrcp.f32 %v1033_v55  ;;  %v1032_v12 = vadd.f32 1.0, %v1304_v18 }
 0x27e   :  { %v1306_v38 = vpop.eup %1305 }
 0x27f   :  { %1315 = vrcp.f32 %v1032_v12  ;;  %v1035_v3 = vadd.f32 1.0, %v1306_v38 }
 0x280   :  { %v1308_v35 = vpop.eup %1307 }
 0x281   :  { %1317 = vrcp.f32 %v1035_v3  ;;  %v1034_v39 = vadd.f32 1.0, %v1308_v35 }
 0x282   :  { %v1310_v40 = vpop.eup %1309 }
 0x283   :  { %1319 = vrcp.f32 %v1034_v39  ;;  %v1037_v42 = vadd.f32 1.0, %v1310_v40 }
 0x284   :  { %v1312_v44 = vpop.eup %1311 }
 0x285   :  { %1321 = vrcp.f32 %v1037_v42  ;;  %v1036_v17 = vadd.f32 1.0, %v1312_v44 }
 0x287   :  { %1323 = vrcp.f32 %v1036_v17 }
 0x28a   :  { %v1314_v45 = vpop.eup %1313 }
 0x28b   :  { %v1061_v57 = vsel %vm1052_vm4, %v1314_v45, %v1055_v56 }
 0x28c   :  { %v1316_v16 = vpop.eup %1315  ;;  %1067 = vst [vmem:[%s1893_s14 + $0x8] sm:$0xff] %v1061_v57 }
 0x28d   :  { %v1060_v1 = vsel %vm1052_vm4, %v1316_v16, %v1054_v19 }
 0x28e   :  { %v1318_v5 = vpop.eup %1317  ;;  %1066 = vst [vmem:[%s1893_s14] sm:$0xff] %v1060_v1 }
 0x28f   :  { %v1063_v21 = vsel %vm1052_vm4, %v1318_v5, %v1057_v13 }
 0x290   :  { %v1320_v61 = vpop.eup %1319  ;;  %1069 = vst [vmem:[%s1893_s14 + $0x18] sm:$0xff] %v1063_v21 }
 0x291   :  { %v1062_v62 = vsel %vm1052_vm4, %v1320_v61, %v1056_v23 }
 0x292   :  { %v1322_v48 = vpop.eup %1321  ;;  %1068 = vst [vmem:[%s1893_s14 + $0x10] sm:$0xff] %v1062_v62 }
 0x293   :  { %v1065_v63 = vsel %vm1052_vm4, %v1322_v48, %v1059_v28 }
 0x294   :  { %v1324_v47 = vpop.eup %1323  ;;  %1071 = vst [vmem:[%s1893_s14 + $0x28] sm:$0xff] %v1065_v63 }
 0x295   :  { %v1064_v2 = vsel %vm1052_vm4, %v1324_v47, %v1058_v30 }
 0x296   :  { %1070 = vst [vmem:[%s1893_s14 + $0x20] sm:$0xff] %v1064_v2 }

</bundles_post_ra>
